<compile_context>
chip_gen: v7x
topology: tpu7x:2x2x1
jax: 0.10.0
libtpu: 0.0.40
codegen_flags: <defaults>
</compile_context>

<pallas_src>
import functools

import jax
import jax.numpy as jnp
from jax.experimental import pallas as pl
from jax.experimental.pallas import tpu as pltpu

BN_EPS = 1e-5


def pn_stats_kernel(xt_ref, wp_ref, gram_ref, ymax_ref, ymin_ref, *, precision):
    # xt_ref:   (1, G1, TN)  transposed, ones-augmented point tile (G1 = Cin + 1)
    # wp_ref:   (Cp, G1)     zero-padded weight; ones-row column is 0 (bias dropped)
    # gram_ref: (1, G1, G1)  per-b accumulator of sum_n x~ x~^T       (output block)
    # ymax_ref: (1, Cp, 1)   per-b running max over points of y = W x (output block)
    # ymin_ref: (1, Cp, 1)   per-b running min over points of y       (output block)
    n = pl.program_id(1)

    xt = xt_ref[0]                                            # (G1, TN), lane-dense

    # Linear on the MXU: y^T = W_pad @ x~^T -> (Cp, TN).
    yt = jnp.dot(wp_ref[...], xt,
                 preferred_element_type=jnp.float32, precision=precision)

    # Augmented Gram matrix on the MXU (contraction over the TN lane axis).
    g = jax.lax.dot_general(xt, xt, (((1,), (1,)), ((), ())),
                            preferred_element_type=jnp.float32,
                            precision=precision)              # (G1, G1)

    # Per-channel extrema over this tile (lane-axis reduce -> XLU, VPU combine).
    tmax = jnp.max(yt, axis=1, keepdims=True)                 # (Cp, 1)
    tmin = jnp.min(yt, axis=1, keepdims=True)                 # (Cp, 1)

    @pl.when(n == 0)
    def _init():
        gram_ref[0] = g
        ymax_ref[0] = tmax
        ymin_ref[0] = tmin

    @pl.when(n > 0)
    def _accum():
        gram_ref[0] += g
        ymax_ref[0] = jnp.maximum(ymax_ref[0], tmax)
        ymin_ref[0] = jnp.minimum(ymin_ref[0], tmin)


def _pick_row_tile(n, max_tile):
    """Largest lane-aligned (multiple of 128) tile <= max_tile dividing n."""
    if n <= max_tile:
        return n
    t = (max_tile // 128) * 128
    while t >= 128:
        if n % t == 0:
            return t
        t -= 128
    # TODO(synk): N has no multiple-of-128 divisor <= max_tile; fall back to a
    # single full-N tile (may need a larger vmem_limit for very large odd N).
    return n


def pn_forward(x, w, b, gamma, beta, *, max_rows_per_tile=4096,
               precision=jax.lax.Precision.HIGHEST):
    """x: (B, N, Cin).  w: (Cout, Cin).  b/gamma/beta: (Cout,).
    Returns (B, Cout, 1) matching the PyTorch module output."""
    B, N, Cin = x.shape
    Cout = w.shape[0]
    G1 = Cin + 1
    Cp = ((Cout + 127) // 128) * 128          # lane-dense channel padding
    TN = _pick_row_tile(N, max_rows_per_tile)
    assert N % TN == 0

    # Keep bf16 activations if the caller supplies them (halves HBM traffic);
    # all accumulation stays in f32 via preferred_element_type.
    cdt = jnp.bfloat16 if x.dtype == jnp.bfloat16 else jnp.float32

    # Lane-dense streaming layout: (B, Cin+1, N) with an appended row of ones so
    # the Gram matrix carries sum(x) (and the point count) for free.
    xt = jnp.concatenate(
        [jnp.swapaxes(x.astype(cdt), 1, 2),
         jnp.ones((B, 1, N), cdt)], axis=1)                    # (B, G1, N)

    # (Cp, G1) weight; padded channels and the ones-row column are zero.
    # The Linear bias is dropped: it cancels against the BN mean subtraction.
    wp = jnp.zeros((Cp, G1), cdt).at[:Cout, :Cin].set(w.astype(cdt))
    del b

    kernel = functools.partial(pn_stats_kernel, precision=precision)

    gram, ymax, ymin = pl.pallas_call(
        kernel,
        out_shape=(
            jax.ShapeDtypeStruct((B, G1, G1), jnp.float32),
            jax.ShapeDtypeStruct((B, Cp, 1), jnp.float32),
            jax.ShapeDtypeStruct((B, Cp, 1), jnp.float32),
        ),
        grid_spec=pltpu.PrefetchScalarGridSpec(
            num_scalar_prefetch=0,
            grid=(B, N // TN),
            in_specs=[
                pl.BlockSpec((1, G1, TN), lambda bb, nn: (bb, 0, nn)),
                pl.BlockSpec((Cp, G1), lambda bb, nn: (0, 0)),
            ],
            out_specs=(
                pl.BlockSpec((1, G1, G1), lambda bb, nn: (bb, 0, 0)),
                pl.BlockSpec((1, Cp, 1), lambda bb, nn: (bb, 0, 0)),
                pl.BlockSpec((1, Cp, 1), lambda bb, nn: (bb, 0, 0)),
            ),
        ),
        compiler_params=pltpu.CompilerParams(
            # No cross-b state -> B is truly parallel (both TCs on v7x);
            # the n axis carries the per-b output-block accumulators.
            dimension_semantics=("parallel", "arbitrary"),
            vmem_limit_bytes=32 * 1024 * 1024,
        ),
    )(xt, wp)

    # ---- Tiny finalize in plain JAX (all tensors are (Cout,) / (B, Cout)). ----
    hp = jax.lax.Precision.HIGHEST
    wt = w.astype(jnp.float32).T                              # (Cin, Cout)
    G = jnp.sum(gram, axis=0)                                 # (G1, G1) global
    sxx = G[:Cin, :Cin]                                       # sum_n x x^T
    sx = G[:Cin, Cin]                                         # sum_n x
    count = jnp.float32(B * N)

    sum_y = jnp.dot(sx, wt, precision=hp)                     # sum_n y (no bias)
    mean = sum_y / count
    sumsq = jnp.sum(wt * jnp.dot(sxx, wt, precision=hp), axis=0)   # sum_n y^2
    var = jnp.maximum(sumsq / count - mean * mean, 0.0)

    scale = gamma.astype(jnp.float32) * jax.lax.rsqrt(var + BN_EPS)
    shift = beta.astype(jnp.float32) - mean * scale

    ymax = ymax[:, :Cout, 0]                                  # (B, Cout)
    ymin = ymin[:, :Cout, 0]
    sel = jnp.where(scale >= 0.0, ymax, ymin)                 # max commutes w/ BN+relu
    out = jnp.maximum(sel * scale + shift, 0.0)
    return out[:, :, None]                                    # (B, Cout, 1)


def _reference(x, w, b, gamma, beta):
    # Pure-JAX reference mirroring the PyTorch module (training-mode BN).
    y = jnp.einsum("bnc,oc->bno", x, w,
                   precision=jax.lax.Precision.HIGHEST) + b
    mean = jnp.mean(y, axis=(0, 1), keepdims=True)
    var = jnp.mean((y - mean) ** 2, axis=(0, 1), keepdims=True)
    y = (y - mean) * jax.lax.rsqrt(var + BN_EPS) * gamma + beta
    y = jnp.maximum(y, 0.0)
    return jnp.max(y, axis=1)[:, :, None]                     # (B, Cout, 1)


if __name__ == "__main__":
    B, N, Cin, Cout = 2, 256, 8, 32

    key = jax.random.PRNGKey(0)
    kx, kw, kb, kg, kbe = jax.random.split(key, 5)

    x = jax.random.normal(kx, (B, N, Cin), dtype=jnp.float32)
    w = jax.random.normal(kw, (Cout, Cin), dtype=jnp.float32) * 0.1
    b = jax.random.normal(kb, (Cout,), dtype=jnp.float32) * 0.1
    # Include negative gammas so the max-vs-min sign handling is exercised.
    gamma = 0.5 * jax.random.normal(kg, (Cout,), dtype=jnp.float32) + 0.5
    beta = 0.1 * jax.random.normal(kbe, (Cout,), dtype=jnp.float32)

    # max_rows_per_tile=128 -> grid (B, N//128) = (2, 2): exercises per-b init,
    # multi-step Gram/extrema accumulation, and the parallel-b output blocks.
    out = pn_forward(x, w, b, gamma, beta, max_rows_per_tile=128)
    jax.block_until_ready(out)

    ref = _reference(x, w, b, gamma, beta)
    assert out.shape == (B, Cout, 1), out.shape
    err = float(jnp.max(jnp.abs(out - ref)))
    assert jnp.allclose(out, ref, atol=1e-4, rtol=1e-4), err

    print("KERNEL_OK")
</pallas_src>

<mosaic_0001>
module attributes {stable_mosaic.version = 11 : i64} {
  func.func @pn_stats_kernel(%arg0: i32, %arg1: i32, %arg2: memref<1x9x128xf32, #tpu.memory_space<vmem>>, %arg3: memref<128x9xf32, #tpu.memory_space<vmem>>, %arg4: memref<1x9x9xf32, #tpu.memory_space<vmem>>, %arg5: memref<1x128x1xf32, #tpu.memory_space<vmem>>, %arg6: memref<1x128x1xf32, #tpu.memory_space<vmem>>) attributes {dimension_semantics = [#tpu.dimension_semantics<parallel>, #tpu.dimension_semantics<arbitrary>], iteration_bounds = array<i64: 2, 2>, scalar_prefetch = 0 : i64, scratch_operands = 0 : i64, tpu.core_type = #tpu.core_type<tc>, window_params = [{transform_indices = @transform_0, window_bounds = array<i64: 1, 9, 128>}, {pipeline_mode = #tpu.pipeline_mode<synchronous>, transform_indices = @transform_1, window_bounds = array<i64: 128, 9>}, {transform_indices = @transform_2, window_bounds = array<i64: 1, 9, 9>}, {transform_indices = @transform_3, window_bounds = array<i64: 1, 128, 1>}, {transform_indices = @transform_4, window_bounds = array<i64: 1, 128, 1>}]} {
    %c0 = arith.constant 0 : index
    %c0_0 = arith.constant 0 : index
    %c0_1 = arith.constant 0 : index
    %0 = vector.load %arg2[%c0, %c0_0, %c0_1] : memref<1x9x128xf32, #tpu.memory_space<vmem>>, vector<1x9x128xf32>
    %1 = vector.shape_cast %0 : vector<1x9x128xf32> to vector<9x128xf32>
    %c0_2 = arith.constant 0 : index
    %c0_3 = arith.constant 0 : index
    %2 = vector.load %arg3[%c0_2, %c0_3] : memref<128x9xf32, #tpu.memory_space<vmem>>, vector<128x9xf32>
    %cst = arith.constant dense<0.000000e+00> : vector<128x128xf32>
    %3 = tpu.matmul %2, %1, %cst {dimension_numbers = #tpu.dot_dimension_numbers<[1], [0], [0], [1], [0, 0, 1, 1], [], []>, precision = #tpu.contract_precision<fp32>} : vector<128x9xf32>, vector<9x128xf32>, vector<128x128xf32> -> vector<128x128xf32>
    %cst_4 = arith.constant dense<0.000000e+00> : vector<9x9xf32>
    %4 = tpu.matmul %1, %1, %cst_4 {dimension_numbers = #tpu.dot_dimension_numbers<[1], [1], [0], [0], [0, 0, 1, 0], [], []>, precision = #tpu.contract_precision<fp32>} : vector<9x128xf32>, vector<9x128xf32>, vector<9x9xf32> -> vector<9x9xf32>
    %cst_5 = arith.constant dense<0xFF800000> : vector<128xf32>
    %5 = vector.multi_reduction <maximumf>, %3, %cst_5 [1] : vector<128x128xf32> to vector<128xf32>
    %6 = vector.shape_cast %5 : vector<128xf32> to vector<128x1xf32>
    %cst_6 = arith.constant dense<0x7F800000> : vector<128xf32>
    %7 = vector.multi_reduction <minimumf>, %3, %cst_6 [1] : vector<128x128xf32> to vector<128xf32>
    %8 = vector.shape_cast %7 : vector<128xf32> to vector<128x1xf32>
    %c0_i32 = arith.constant 0 : i32
    %9 = arith.cmpi eq, %arg1, %c0_i32 : i32
    %10 = arith.extui %9 : i1 to i32
    %c0_i32_7 = arith.constant 0 : i32
    %11 = arith.cmpi ne, %10, %c0_i32_7 : i32
    scf.if %11 {
      %c0_10 = arith.constant 0 : index
      %c0_11 = arith.constant 0 : index
      %c0_12 = arith.constant 0 : index
      %15 = vector.load %arg4[%c0_10, %c0_11, %c0_12] : memref<1x9x9xf32, #tpu.memory_space<vmem>>, vector<1x9x9xf32>
      %16 = vector.shape_cast %15 : vector<1x9x9xf32> to vector<9x9xf32>
      %17 = vector.shape_cast %4 : vector<9x9xf32> to vector<1x9x9xf32>
      tpu.vector_store %arg4[%c0_10, %c0_11, %c0_12], %17 {strides = array<i32>} : memref<1x9x9xf32, #tpu.memory_space<vmem>>, vector<1x9x9xf32>,
      %c0_13 = arith.constant 0 : index
      %c0_14 = arith.constant 0 : index
      %c0_15 = arith.constant 0 : index
      %18 = vector.load %arg5[%c0_13, %c0_14, %c0_15] : memref<1x128x1xf32, #tpu.memory_space<vmem>>, vector<1x128x1xf32>
      %19 = vector.shape_cast %18 : vector<1x128x1xf32> to vector<128x1xf32>
      %20 = vector.shape_cast %6 : vector<128x1xf32> to vector<1x128x1xf32>
      tpu.vector_store %arg5[%c0_13, %c0_14, %c0_15], %20 {strides = array<i32>} : memref<1x128x1xf32, #tpu.memory_space<vmem>>, vector<1x128x1xf32>,
      %c0_16 = arith.constant 0 : index
      %c0_17 = arith.constant 0 : index
      %c0_18 = arith.constant 0 : index
      %21 = vector.load %arg6[%c0_16, %c0_17, %c0_18] : memref<1x128x1xf32, #tpu.memory_space<vmem>>, vector<1x128x1xf32>
      %22 = vector.shape_cast %21 : vector<1x128x1xf32> to vector<128x1xf32>
      %23 = vector.shape_cast %8 : vector<128x1xf32> to vector<1x128x1xf32>
      tpu.vector_store %arg6[%c0_16, %c0_17, %c0_18], %23 {strides = array<i32>} : memref<1x128x1xf32, #tpu.memory_space<vmem>>, vector<1x128x1xf32>,
    } else {
    }
    %c0_i32_8 = arith.constant 0 : i32
    %12 = arith.cmpi sgt, %arg1, %c0_i32_8 : i32
    %13 = arith.extui %12 : i1 to i32
    %c0_i32_9 = arith.constant 0 : i32
    %14 = arith.cmpi ne, %13, %c0_i32_9 : i32
    scf.if %14 {
      %c0_10 = arith.constant 0 : index
      %c0_11 = arith.constant 0 : index
      %c0_12 = arith.constant 0 : index
      %15 = vector.load %arg4[%c0_10, %c0_11, %c0_12] : memref<1x9x9xf32, #tpu.memory_space<vmem>>, vector<1x9x9xf32>
      %16 = vector.shape_cast %15 : vector<1x9x9xf32> to vector<9x9xf32>
      %17 = arith.addf %16, %4 : vector<9x9xf32>
      %c0_13 = arith.constant 0 : index
      %c0_14 = arith.constant 0 : index
      %c0_15 = arith.constant 0 : index
      %18 = vector.load %arg4[%c0_13, %c0_14, %c0_15] : memref<1x9x9xf32, #tpu.memory_space<vmem>>, vector<1x9x9xf32>
      %19 = vector.shape_cast %18 : vector<1x9x9xf32> to vector<9x9xf32>
      %20 = vector.shape_cast %17 : vector<9x9xf32> to vector<1x9x9xf32>
      tpu.vector_store %arg4[%c0_13, %c0_14, %c0_15], %20 {strides = array<i32>} : memref<1x9x9xf32, #tpu.memory_space<vmem>>, vector<1x9x9xf32>,
      %c0_16 = arith.constant 0 : index
      %c0_17 = arith.constant 0 : index
      %c0_18 = arith.constant 0 : index
      %21 = vector.load %arg5[%c0_16, %c0_17, %c0_18] : memref<1x128x1xf32, #tpu.memory_space<vmem>>, vector<1x128x1xf32>
      %22 = vector.shape_cast %21 : vector<1x128x1xf32> to vector<128x1xf32>
      %23 = arith.maximumf %22, %6 : vector<128x1xf32>
      %c0_19 = arith.constant 0 : index
      %c0_20 = arith.constant 0 : index
      %c0_21 = arith.constant 0 : index
      %24 = vector.load %arg5[%c0_19, %c0_20, %c0_21] : memref<1x128x1xf32, #tpu.memory_space<vmem>>, vector<1x128x1xf32>
      %25 = vector.shape_cast %24 : vector<1x128x1xf32> to vector<128x1xf32>
      %26 = vector.shape_cast %23 : vector<128x1xf32> to vector<1x128x1xf32>
      tpu.vector_store %arg5[%c0_19, %c0_20, %c0_21], %26 {strides = array<i32>} : memref<1x128x1xf32, #tpu.memory_space<vmem>>, vector<1x128x1xf32>,
      %c0_22 = arith.constant 0 : index
      %c0_23 = arith.constant 0 : index
      %c0_24 = arith.constant 0 : index
      %27 = vector.load %arg6[%c0_22, %c0_23, %c0_24] : memref<1x128x1xf32, #tpu.memory_space<vmem>>, vector<1x128x1xf32>
      %28 = vector.shape_cast %27 : vector<1x128x1xf32> to vector<128x1xf32>
      %29 = arith.minimumf %28, %8 : vector<128x1xf32>
      %c0_25 = arith.constant 0 : index
      %c0_26 = arith.constant 0 : index
      %c0_27 = arith.constant 0 : index
      %30 = vector.load %arg6[%c0_25, %c0_26, %c0_27] : memref<1x128x1xf32, #tpu.memory_space<vmem>>, vector<1x128x1xf32>
      %31 = vector.shape_cast %30 : vector<1x128x1xf32> to vector<128x1xf32>
      %32 = vector.shape_cast %29 : vector<128x1xf32> to vector<1x128x1xf32>
      tpu.vector_store %arg6[%c0_25, %c0_26, %c0_27], %32 {strides = array<i32>} : memref<1x128x1xf32, #tpu.memory_space<vmem>>, vector<1x128x1xf32>,
    } else {
    }
    return
  }
  func.func @transform_0(%arg0: i32, %arg1: i32) -> (i32, i32, i32) {
    %c0_i32 = arith.constant 0 : i32
    %c0_i32_0 = arith.constant 0 : i32
    return %arg0, %c0_i32, %arg1 : i32, i32, i32
  }
  func.func @transform_1(%arg0: i32, %arg1: i32) -> (i32, i32) {
    %c0_i32 = arith.constant 0 : i32
    %c0_i32_0 = arith.constant 0 : i32
    %c0_i32_1 = arith.constant 0 : i32
    return %c0_i32, %c0_i32_0 : i32, i32
  }
  func.func @transform_2(%arg0: i32, %arg1: i32) -> (i32, i32, i32) {
    %c0_i32 = arith.constant 0 : i32
    %c0_i32_0 = arith.constant 0 : i32
    %c0_i32_1 = arith.constant 0 : i32
    return %arg0, %c0_i32, %c0_i32_0 : i32, i32, i32
  }
  func.func @transform_3(%arg0: i32, %arg1: i32) -> (i32, i32, i32) {
    %c0_i32 = arith.constant 0 : i32
    %c0_i32_0 = arith.constant 0 : i32
    %c0_i32_1 = arith.constant 0 : i32
    return %arg0, %c0_i32, %c0_i32_0 : i32, i32, i32
  }
  func.func @transform_4(%arg0: i32, %arg1: i32) -> (i32, i32, i32) {
    %c0_i32 = arith.constant 0 : i32
    %c0_i32_0 = arith.constant 0 : i32
    %c0_i32_1 = arith.constant 0 : i32
    return %arg0, %c0_i32, %c0_i32_0 : i32, i32, i32
  }
}

</mosaic_0001>

<bundles_post_ra>
// kernel: tpu_custom_call.1
= control target key start
LH: loop header
LB: loop body
LE: loop exit
PB: predicated region body
PF: predicated region fallthrough
CT: control target
= control target key end

     0   :  { %s2947_s15 = smov 0   ;;  %s2949_s16 = smov 0   ;;  %s3713_s0 = inlined_call_operand.vmem [shape: f32[2,9,256], index: 0, kind: input, shape index: {}]   ;;  %s3714_s1 = inlined_call_operand.vmem [shape: f32[128,9], index: 1, kind: input, shape index: {}]   ;;  %s3715_s2 = inlined_call_operand.vmem [shape: f32[2,9,9], index: 2, kind: output, shape index: {0}]   ;;  %s3716_s3 = inlined_call_operand.vmem [shape: f32[2,128,1], index: 3, kind: output, shape index: {1}]   ;;  %s3717_s4 = inlined_call_operand.vmem [shape: f32[2,128,1], index: 4, kind: output, shape index: {2}]  }
   0x1   :  { %s2951_s17 = smov 0   ;;  %s2953_s18 = smov 0  }
   0x2   :  { %s2955_s19 = smov 0   ;;  %s2957_s20 = smov 0  }
   0x3   :  { %s2959_s21 = smov 0  }
   0x4 LB: > { %s24_s22 = sadd.s32 1, %s2912_s19  ;;  %s27_s23 = sadd.s32 1, %s2916_s20  ;;  %s2920_s21 = sphi %s2959_s21, %s15_s21   ;;  %s2916_s20 = sphi %s2957_s20, %s3731_s20   ;;  %s2912_s19 = sphi %s2955_s19, %s3730_s19   ;;  %s2908_s18 = sphi %s2953_s18, %s3729_s18   ;;  %s2904_s17 = sphi %s2951_s17, %s3728_s17   ;;  %s2900_s16 = sphi %s2949_s16, %s3727_s16   ;;  %s2896_s15 = sphi %s2947_s15, %s3726_s15  }
   0x5   : > { %p25_p0 = scmp.ge.s32.totalorder %s24_s22, 2  ;;  %p43_p1 = scmp.ne.s32.totalorder %s2900_s16, %s2896_s15 }
   0x6   : > { %p44_p2 = scmp.eq.s32.totalorder %s2920_s21, 0  ;;  %s36_s27 = sadd.s32 1, %s2900_s16 }
   0x7   : > { %s3733_s22 = smov (%p25_p0, %s24_s22), 0  ;;  %s3735_s23 = smov (!%p25_p0, %s27_s23), %s2916_s20 }
   0x8   : > { %p45_p3 = por %p44_p2, %p43_p1  ;;  %p29_p4 = scmp.ge.s32.totalorder %s3735_s23, 2 }
   0x9   : > { %s32_s24 = ssub.s32 %s2912_s19, %s3733_s22  ;;  %p2309_p6 = scmp.ge.s32.totalorder %s2920_s21, 4 }
   0xa   : > { %s3737_s23 = smov (%p29_p4, %s3735_s23), 0 }
   0xb   : > { %s31_s25 = ssub.s32 %s2916_s20, %s3737_s23  ;;  %171 = sbr.rel (%p2309_p6) target bundleno = 25 (0x19), region = 20 }
   0xc   : > { %s33_s26 = sor.u32 %s32_s24, %s31_s25 }
   0xd   : > { %p34_p5 = scmp.eq.s32.totalorder %s33_s26, 0 }
   0xf   : > { %s2998_s28 = scalar_select %p34_p5, %s2900_s16, %s36_s27  }
  0x12   : > { %174 = sbr.rel (!%p45_p3) target bundleno = 25 (0x19), region = 24  ;;  %s176_s29 = sand.u32 (%p45_p3), 1, %s2900_s16  }
  0x13   : > { %s2311_s30 = sshll.u32 (%p45_p3), %s2916_s20, 2  ;;  %s2310_s5 = sshll.u32 (%p45_p3), %s176_s29, 4 }
  0x14   : > { %s180_s6 = sadd.s32 (%p45_p3), %s2912_s19, %s2311_s30  ;;  %s178_s11 = scalar_lea.vmem (%p45_p3), [#allocation2], %s2310_s5 }
  0x15   : > { %s2312_s7 = sshll.u32 (%p45_p3), %s180_s6, 3 }
  0x16   : > { %s182_s10 = scalar_lea.vmem (%p45_p3), %s3713_s0, %s2312_s7 }
  0x17   : > { %v212_v0 = vld [vmem:[%s182_s10] sm:$0xff] (%p45_p3)  ;;  %v214_v1 = vld [vmem:[%s182_s10 + $0x10] sm:$0xff] (%p45_p3) }
  0x18   : > { %213 = vst [vmem:[%s178_s11] sm:$0xff] (%p45_p3), %v212_v0  ;;  %215 = vst [vmem:[%s178_s11 + $0x8] sm:$0xff] (%p45_p3), %v214_v1 }
  0x19 PF: > { %p2313_p7 = scmp.ge.s32.totalorder %s2920_s21, 1  ;;  %p220_p8 = scmp.lt.s32.totalorder %s2920_s21, 5 }
  0x1b   : > { %p221_p9 = pnand %p2313_p7, %p220_p8 }
  0x1c   : > { %s227_s12 = sand.u32 (!%p221_p9), 1, %s2896_s15   ;;  %vm344_vm0 = vcmask (!%p221_p9), 1040384   ;;  %v279_v2 = vld [vmem:[%s3714_s1] sm:$0xff] (!%p221_p9)  ;;  %vm295_vm1 = vcmask (!%p221_p9), 72704   ;;  %v280_v3 = vld [vmem:[%s3714_s1 + $0x8] sm:$0xff] (!%p221_p9)  ;;  %v281_v4 = vld [vmem:[%s3714_s1 + $0x10] sm:$0xff] (!%p221_p9) }
  0x1d   : > { %224 = sbr.rel (%p221_p9) target bundleno = 571 (0x23b), region = 62  ;;  %s2314_s29 = sshll.u32 (!%p221_p9), %s227_s12, 4  ;;  %v297_v5 = vsel (!%p221_p9), %vm295_vm1, %v279_v2, 0  ;;  %v300_v6 = vsel (!%p221_p9), %vm295_vm1, %v280_v3, 0  ;;  %v303_v7 = vsel (!%p221_p9), %vm295_vm1, %v281_v4, 0  ;;  %v282_v8 = vld [vmem:[%s3714_s1 + $0x18] sm:$0xff] (!%p221_p9) }
  0x1e   : > { %v283_v9 = vld [vmem:[%s3714_s1 + $0x20] sm:$0xff] (!%p221_p9)  ;;  %v3028_v10 = vand.u32 (!%p221_p9), 4294901760, %v297_v5  ;;  %v3030_v11 = vand.u32 (!%p221_p9), 4294901760, %v300_v6  ;;  %v3032_v12 = vand.u32 (!%p221_p9), 4294901760, %v303_v7  ;;  %v306_v13 = vsel (!%p221_p9), %vm295_vm1, %v282_v8, 0  ;;  %v284_v14 = vld [vmem:[%s3714_s1 + $0x28] sm:$0xff] (!%p221_p9) }
  0x1f   : > { %s229_s9 = scalar_lea.vmem (!%p221_p9), [#allocation2], %s2314_s29  ;;  %v309_v17 = vsel (!%p221_p9), %vm295_vm1, %v283_v9, 0  ;;  %v312_v18 = vsel (!%p221_p9), %vm295_vm1, %v284_v14, 0  ;;  %v3049_v22 = vand.u32 (!%p221_p9), 4294901760, %v306_v13  ;;  %v285_v23 = vld [vmem:[%s3714_s1 + $0x30] sm:$0xff] (!%p221_p9)  ;;  %p262_p10 = scmp.lt.s32.totalorder (!%p221_p9), %s2908_s18, 1 }
  0x20   : > { %v277_v15 = vld [vmem:[%s229_s9] sm:$0xff] (!%p221_p9)  ;;  %v3038_v16 = vld [vmem:[%s229_s9 + $0x8] sm:$0x1] (!%p221_p9)  ;;  %v3047_v21 = vsub.f32 (!%p221_p9), %v297_v5, %v3028_v10  ;;  %v3059_v26 = vsub.f32 (!%p221_p9), %v300_v6, %v3030_v11  ;;  %v3066_v28 = vsub.f32 (!%p221_p9), %v303_v7, %v3032_v12  ;;  %v3068_v29 = vand.u32 (!%p221_p9), 4294901760, %v309_v17  ;;  %p2321_p11 = scmp.ne.s32.totalorder (!%p221_p9), %s2904_s17, 0 }
  0x21   : > { %v346_v19 = vsel (!%p221_p9), %vm344_vm0, %v3038_v16, 0  ;;  %v3044_v20 = vand.u32 (!%p221_p9), 4294901760, %v277_v15  ;;  %v286_v24 = vld [vmem:[%s3714_s1 + $0x38] sm:$0xff] (!%p221_p9)  ;;  %v3070_v30 = vand.u32 (!%p221_p9), 4294901760, %v312_v18  ;;  %v287_v31 = vld [vmem:[%s3714_s1 + $0x40] sm:$0xff] (!%p221_p9)  ;;  %v315_v34 = vsel (!%p221_p9), %vm295_vm1, %v285_v23, 0 }
  0x22   : > { %v352_v25 = vand.u32 (!%p221_p9), 4294901760, %v346_v19  ;;  %2520 = vmatprep.mubr.f32.mxu0 (!%p221_p9), %v3047_v21  ;;  %v318_v35 = vsel (!%p221_p9), %vm295_vm1, %v286_v24, 0  ;;  %v288_v36 = vld [vmem:[%s3714_s1 + $0x48] sm:$0xff] (!%p221_p9)  ;;  %v3087_v37 = vsub.f32 (!%p221_p9), %v306_v13, %v3049_v22  ;;  %v3090_v38 = vsub.f32 (!%p221_p9), %v309_v17, %v3068_v29  ;;  %v289_v45 = vld [vmem:[%s3714_s1 + $0x50] sm:$0xff] (!%p221_p9)  ;;  %v290_v50 = vld [vmem:[%s3714_s1 + $0x58] sm:$0xff] (!%p221_p9) }
  0x23   : > { %v3062_v27 = vsub.f32 (!%p221_p9), %v277_v15, %v3044_v20  ;;  %v3092_v39 = vand.u32 (!%p221_p9), 4294901760, %v315_v34  ;;  %v3094_v40 = vand.u32 (!%p221_p9), 4294901760, %v318_v35  ;;  %v417_v42 = vand.u32 (!%p221_p9), 4294901760, %v3047_v21 }
  0x24   : > { %s3739_s18 = smov (!%p262_p10, %s2908_s18), 1  ;;  %v3077_v32 = vpack.c.bf16 %v352_v25, %v3044_v20  ;;  %v3079_v33 = vsub.f32 %v346_v19, %v352_v25  ;;  %v321_v43 = vsel %vm295_vm1, %v287_v31, 0  ;;  %v427_v44 = vand.u32 4294901760, %v3059_v26  ;;  %v291_v19 = vld [vmem:[%s3714_s1 + $0x60] sm:$0xff] }
  0x25   : > { %s2325_s27 = sshll.u32 %s3739_s18, 4  ;;  %s2326_s29 = sshll.u32 %s3739_s18, 7  ;;  %v3118_v46 = vsub.f32 %v312_v18, %v3070_v30  ;;  %v3121_v47 = vsub.f32 %v315_v34, %v3092_v39  ;;  %v3129_v48 = vand.u32 4294901760, %v321_v43  ;;  %v324_v49 = vsel %vm295_vm1, %v288_v36, 0 }
  0x26   : > { %v3098_v41 = vpack.c.bf16 %v3079_v33, %v3062_v27  ;;  %s3103_s5 = scalar_lea.vmem %s3715_s2, %s2325_s27  ;;  %s3108_s8 = scalar_lea.vmem %s3716_s3, %s2326_s29  ;;  %2671 = vmatprep.subr.bf16.mxu1 %v3077_v32  ;;  %v418_v51 = vsub.f32 %v3047_v21, %v417_v42  ;;  %v428_v52 = vsub.f32 %v3059_v26, %v427_v44  ;;  %v3142_v53 = vand.u32 4294901760, %v324_v49 }
  0x27   : > { %s3126_s12 = scalar_lea.vmem %s3717_s4, %s2326_s29  ;;  %2673 = vmatpush3.bf16.msra.mxu1 %v3077_v32  ;;  %v437_v54 = vand.u32 4294901760, %v3066_v28  ;;  %v3147_v55 = vsub.f32 %v318_v35, %v3094_v40  ;;  %v3150_v56 = vsub.f32 %v321_v43, %v3129_v48  ;;  %v327_v57 = vsel %vm295_vm1, %v289_v45, 0  ;;  %v292_v35 = vld [vmem:[%s3714_s1 + $0x68] sm:$0xff]  ;;  %v293_v45 = vld [vmem:[%s3714_s1 + $0x70] sm:$0xff] }
  0x28   : > { %2679 = vmatprep.subr.bf16.mxu0 %v3098_v41  ;;  %v447_v58 = vand.u32 4294901760, %v3087_v37  ;;  %v419_v59 = vand.u32 4294901760, %v418_v51  ;;  %v429_v60 = vand.u32 4294901760, %v428_v52  ;;  %v330_v62 = vsel %vm295_vm1, %v290_v50, 0 }
  0x29   : > { %2681 = vmatpush3.bf16.msra.mxu0 %v3098_v41  ;;  %v438_v61 = vsub.f32 %v3066_v28, %v437_v54  ;;  %v3160_v63 = vsub.f32 %v324_v49, %v3142_v53  ;;  %v3162_v0 = vand.u32 4294901760, %v327_v57  ;;  %v457_v2 = vand.u32 4294901760, %v3090_v38 }
  0x2a   : > { %2683 = vmatprep.subr.bf16.mxu0 %v3077_v32  ;;  %v448_v1 = vsub.f32 %v3087_v37, %v447_v58  ;;  %2464 = vmatprep.mubr.f32.mxu1 %v419_v59  ;;  %v467_v4 = vand.u32 4294901760, %v3118_v46  ;;  %v3171_v5 = vand.u32 4294901760, %v3062_v27  ;;  %v585_v6 = vand.u32 4294901760, %v3079_v33 }
  0x2b   : > { %v439_v3 = vand.u32 4294901760, %v438_v61  ;;  %v3177_v7 = vsub.f32 %v327_v57, %v3162_v0  ;;  %v3179_v9 = vand.u32 4294901760, %v330_v62  ;;  %v458_v13 = vsub.f32 %v3090_v38, %v457_v2  ;;  %2465 = vmatmul.mubr.f32.vlgmr.msra.gmra.mrb[0].mxu1 %v429_v60  ;;  %v294_v57 = vld [vmem:[%s3714_s1 + $0x78] sm:$0xff] }
  0x2c   : > { %2521 = vmatmul.mubr.f32.vlgmr.msra.gmra.mrb[0].mxu0 %v3059_v26  ;;  %v449_v8 = vand.u32 4294901760, %v448_v1  ;;  %v468_v14 = vsub.f32 %v3118_v46, %v467_v4  ;;  %v3188_v15 = vpack.c.bf16 %v585_v6, %v3171_v5  ;;  %v477_v17 = vand.u32 4294901760, %v3121_v47 }
  0x2d   : > { %2685 = vmatpush3.bf16.msra.mxu0 %v3077_v32  ;;  %2523 = vmatprep.mubr.f32.mxu0 %v3066_v28  ;;  %v3721_v18 = vand.u32 4294901760, %v3147_v55  ;;  %v459_v23 = vand.u32 4294901760, %v458_v13  ;;  %v3720_v24 = vand.u32 4294901760, %v3150_v56  ;;  %v3719_v25 = vand.u32 4294901760, %v3160_v63 }
  0x2e   : > { %2467 = vmatprep.mubr.f32.mxu1 %v439_v3  ;;  %2687 = vmatprep.subr.bf16.mxu0 %v3188_v15  ;;  %v478_v31 = vsub.f32 %v3121_v47, %v477_v17  ;;  %v3718_v34 = vand.u32 4294901760, %v3177_v7  ;;  %v3208_v36 = vsub.f32 %v330_v62, %v3179_v9  ;;  %v333_v43 = vsel %vm295_vm1, %v291_v19, 0 }
  0x2f   : > { %2468 = vmatmul.mubr.f32.gmra.mrb[2].mxu1 %v449_v8  ;;  %v469_v49 = vand.u32 4294901760, %v468_v14  ;;  %v488_v50 = vsub.f32 %v3147_v55, %v3721_v18  ;;  %v498_v51 = vsub.f32 %v3150_v56, %v3720_v24  ;;  %v3220_v52 = vand.u32 4294901760, %v333_v43 }
  0x30   : > { %2524 = vmatmul.mubr.f32.gmra.mrb[2].mxu0 %v3087_v37  ;;  %2470 = vmatprep.mubr.f32.mxu1 %v459_v23  ;;  %v479_v59 = vand.u32 4294901760, %v478_v31  ;;  %v508_v60 = vsub.f32 %v3160_v63, %v3719_v25  ;;  %v527_v61 = vand.u32 4294901760, %v3208_v36  ;;  %v336_v62 = vsel %vm295_vm1, %v292_v35, 0 }
  0x31   : > { %2526 = vmatprep.mubr.f32.mxu0 %v3090_v38  ;;  %v518_v1 = vsub.f32 %v3177_v7, %v3718_v34  ;;  %v3235_v3 = vsub.f32 %v333_v43, %v3220_v52  ;;  %v3237_v8 = vand.u32 4294901760, %v336_v62  ;;  %v339_v13 = vsel %vm295_vm1, %v293_v45, 0 }
  0x32   : > { %v3241_v14 = vand.u32 4294901760, %v339_v13  ;;  %v342_v19 = vsel %vm295_vm1, %v294_v57, 0  ;;  %v579_v23 = vsub.f32 %v3062_v27, %v3171_v5  ;;  %v586_v31 = vsub.f32 %v3079_v33, %v585_v6 }
  0x33   : > { %2471 = vmatmul.mubr.f32.gmra.mrb[4].mxu1 %v469_v49  ;;  %v489_v35 = vand.u32 4294901760, %v488_v50  ;;  %v499_v34 = vand.u32 4294901760, %v498_v51  ;;  %v3248_v43 = vsub.f32 %v336_v62, %v3237_v8  ;;  %v3250_v25 = vand.u32 4294901760, %v342_v19 }
  0x34   : > { %2527 = vmatmul.mubr.f32.gmra.mrb[4].mxu0 %v3118_v46  ;;  %2473 = vmatprep.mubr.f32.mxu1 %v479_v59  ;;  %v537_v45 = vand.u32 4294901760, %v3235_v3  ;;  %v3254_v24 = vsub.f32 %v339_v13, %v3241_v14  ;;  %v3256_v57 = vand.u32 4294901760, %v579_v23  ;;  %v587_v18 = vand.u32 4294901760, %v586_v31 }
  0x35   : > { %2529 = vmatprep.mubr.f32.mxu0 %v3121_v47  ;;  %v509_v6 = vand.u32 4294901760, %v508_v60  ;;  %v528_v49 = vsub.f32 %v3208_v36, %v527_v61  ;;  %v547_v50 = vand.u32 4294901760, %v3248_v43  ;;  %v3266_v51 = vsub.f32 %v342_v19, %v3250_v25 }
  0x36   : > { %v2674_v33 = vpack.c.bf16 %v587_v18, %v3256_v57  ;;  %v519_v59 = vand.u32 4294901760, %v518_v1  ;;  %v538_v62 = vsub.f32 %v3235_v3, %v537_v45  ;;  %v557_v13 = vand.u32 4294901760, %v3254_v24 }
  0x37   : > { %2474 = vmatmul.mubr.f32.gmra.mrb[6].mxu1 %v489_v35  ;;  %v529_v18 = vand.u32 4294901760, %v528_v49  ;;  %v548_v60 = vsub.f32 %v3248_v43, %v547_v50  ;;  %v567_v19 = vand.u32 4294901760, %v3266_v51  ;;  %v3287_v21 = vand.u32 4294901760, %v3038_v16 }
  0x38   : > { %2530 = vmatmul.mubr.f32.gmra.mrb[6].mxu0 %v3147_v55  ;;  %2476 = vmatprep.mubr.f32.mxu1 %v499_v34  ;;  %v539_v34 = vand.u32 4294901760, %v538_v62  ;;  %v558_v1 = vsub.f32 %v3254_v24, %v557_v13  ;;  %v3722_v28 = vand.u32 4294901760, %v3147_v55  ;;  %v3723_v37 = vand.u32 4294901760, %v3150_v56 }
  0x39   : > { %2532 = vmatprep.mubr.f32.mxu0 %v3150_v56  ;;  %2675 = vmatprep.subr.bf16.mxu1 %v2674_v33  ;;  %v549_v23 = vand.u32 4294901760, %v548_v60  ;;  %v568_v31 = vsub.f32 %v3266_v51, %v567_v19  ;;  %v3298_v26 = vpack.c.bf16 %v3287_v21, %v3044_v20  ;;  %v3724_v38 = vand.u32 4294901760, %v3160_v63 }
  0x3a   : > { %2677 = vmatpush3.bf16.msra.mxu1 %v2674_v33  ;;  %v559_v35 = vand.u32 4294901760, %v558_v1  ;;  %vm2023_vm2 = vcmask (!%p2321_p11), 65536   ;;  %vm2025_vm3 = vcmask (!%p2321_p11), 7168  }
  0x3b   : > { %2718 = vmatprep.subr.bf16.mxu1 %v3098_v41  ;;  %2477 = vmatmul.mubr.f32.gmra.mrb[8].mxu1 %v509_v6  ;;  %v569_v33 = vand.u32 4294901760, %v568_v31 }
  0x3c   : > { %2533 = vmatmul.mubr.f32.gmra.mrb[8].mxu0 %v3160_v63  ;;  %2479 = vmatprep.mubr.f32.mxu1 %v519_v59 }
  0x3d   : > { %2535 = vmatprep.mubr.f32.mxu0 %v3177_v7 }
  0x3f   : > { %2480 = vmatmul.mubr.f32.gmra.mrb[10].mxu1 %v529_v18 }
  0x40   : > { %2536 = vmatmul.mubr.f32.gmra.mrb[10].mxu0 %v3208_v36  ;;  %2482 = vmatprep.mubr.f32.mxu1 %v539_v34 }
  0x41   : > { %2548 = vmatprep.mubr.f32.mxu0 %v417_v42  ;;  %v3725_v42 = vand.u32 4294901760, %v3177_v7 }
  0x43   : > { %2483 = vmatmul.mubr.f32.gmra.mrb[12].mxu1 %v549_v23 }
  0x44   : > { %2549 = vmatmul.mubr.f32.vlgmr.msra.gmra.mrb[0].mxu0 %v427_v44  ;;  %2485 = vmatprep.mubr.f32.mxu1 %v559_v35 }
  0x45   : > { %2689 = vmatpush3.bf16.msra.mxu0 %v3188_v15  ;;  %2551 = vmatprep.mubr.f32.mxu0 %v437_v54 }
  0x46   : > { %2691 = vmatprep.subr.bf16.mxu0 %v3077_v32 }
  0x47   : > { %2486 = vmatmul.mubr.f32.gmra.mrb[14].mxu1 %v569_v33 }
  0x48   : > { %2552 = vmatmul.mubr.f32.gmra.mrb[2].mxu0 %v447_v58  ;;  %2492 = vmatprep.mubr.f32.mxu1 %v3028_v10 }
  0x49   : > { %2554 = vmatprep.mubr.f32.mxu0 %v457_v2 }
  0x4b   : > { %2493 = vmatmul.mubr.f32.vlgmr.msra.gmra.mrb[0].mxu1 %v3030_v11 }
  0x4c   : > { %2555 = vmatmul.mubr.f32.gmra.mrb[4].mxu0 %v467_v4  ;;  %2495 = vmatprep.mubr.f32.mxu1 %v3032_v12 }
  0x4d   : > { %2557 = vmatprep.mubr.f32.mxu0 %v477_v17  ;;  %2719 = vmatpush3.bf16.msra.mxu1 %v3098_v41  ;;  %v1530_v41 = vsub.f32 %v3038_v16, %v3287_v21 }
  0x4e   : > { %2695 = vmatprep.subr.bf16.mxu1 %v3298_v26 }
  0x4f   : > { %2496 = vmatmul.mubr.f32.gmra.mrb[2].mxu1 %v3049_v22  ;;  %v1531_v44 = vand.u32 4294901760, %v1530_v41 }
  0x50   : > { %2558 = vmatmul.mubr.f32.gmra.mrb[6].mxu0 %v3722_v28  ;;  %2498 = vmatprep.mubr.f32.mxu1 %v3068_v29 }
  0x51   : > { %2560 = vmatprep.mubr.f32.mxu0 %v3723_v37  ;;  %v1532_v46 = vsub.f32 %v1530_v41, %v1531_v44  ;;  %v2710_v54 = vpack.c.bf16 %v1531_v44, %v3171_v5 }
  0x53   : > { %2499 = vmatmul.mubr.f32.gmra.mrb[4].mxu1 %v3070_v30  ;;  %v1533_v16 = vand.u32 4294901760, %v1532_v46 }
  0x54   : > { %2561 = vmatmul.mubr.f32.gmra.mrb[8].mxu0 %v3724_v38  ;;  %2501 = vmatprep.mubr.f32.mxu1 %v3092_v39 }
  0x55   : > { %2563 = vmatprep.mubr.f32.mxu0 %v3725_v42  ;;  %v2698_v47 = vpack.c.bf16 %v1533_v16, %v3256_v57 }
  0x57   : > { %2502 = vmatmul.mubr.f32.gmra.mrb[6].mxu1 %v3094_v40 }
  0x58   : > { %2564 = vmatmul.mubr.f32.gmra.mrb[10].mxu0 %v527_v61  ;;  %2504 = vmatprep.mubr.f32.mxu1 %v3129_v48 }
  0x59   : > { %2566 = vmatprep.mubr.f32.mxu0 %v537_v45 }
  0x5b   : > { %2505 = vmatmul.mubr.f32.gmra.mrb[8].mxu1 %v3142_v53 }
  0x5c   : > { %2567 = vmatmul.mubr.f32.gmra.mrb[12].mxu0 %v547_v50  ;;  %2507 = vmatprep.mubr.f32.mxu1 %v3162_v0 }
  0x5d   : > { %2569 = vmatprep.mubr.f32.mxu0 %v557_v13 }
  0x5f   : > { %2508 = vmatmul.mubr.f32.gmra.mrb[10].mxu1 %v3179_v9 }
  0x60   : > { %2570 = vmatmul.mubr.f32.gmra.mrb[14].mxu0 %v567_v19  ;;  %2510 = vmatprep.mubr.f32.mxu1 %v3220_v52 }
  0x61   : > { %2576 = vmatprep.mubr.f32.mxu0 %v3028_v10 }
  0x63   : > { %2511 = vmatmul.mubr.f32.gmra.mrb[12].mxu1 %v3237_v8 }
  0x64   : > { %2577 = vmatmul.mubr.f32.vlgmr.msra.gmra.mrb[0].mxu0 %v3030_v11  ;;  %2513 = vmatprep.mubr.f32.mxu1 %v3241_v14 }
  0x65   : > { %2693 = vmatpush3.bf16.msra.mxu0 %v3077_v32  ;;  %2579 = vmatprep.mubr.f32.mxu0 %v3032_v12  ;;  %v2702_v32 = vpack.c.bf16 %v1530_v41, %v3062_v27 }
  0x67   : > { %2514 = vmatmul.mubr.f32.gmra.mrb[14].mxu1 %v3250_v25 }
  0x68   : > { %2580 = vmatmul.mubr.f32.gmra.mrb[2].mxu0 %v3049_v22  ;;  %2538 = vmatprep.mubr.f32.mxu1 %v3235_v3 }
  0x69   : > { %2582 = vmatprep.mubr.f32.mxu0 %v3068_v29 }
  0x6b   : > { %2539 = vmatmul.mubr.f32.vlgmr.msra.gmra.mrb[12].mxu1 %v3248_v43 }
  0x6c   : > { %2583 = vmatmul.mubr.f32.gmra.mrb[4].mxu0 %v3070_v30  ;;  %2541 = vmatprep.mubr.f32.mxu1 %v3254_v24 }
  0x6d   : > { %2585 = vmatprep.mubr.f32.mxu0 %v3092_v39  ;;  %2697 = vmatpush3.bf16.xpose.msra.mxu1 %v3298_v26 }
  0x6e   : > { %2699 = vmatprep.subr.bf16.mxu1 %v2698_v47 }
  0x6f   : > { %2542 = vmatmul.mubr.f32.gmra.mrb[14].mxu1 %v3266_v51 }
  0x70   : > { %2586 = vmatmul.mubr.f32.gmra.mrb[6].mxu0 %v3094_v40  ;;  %2632 = vmatprep.mubr.f32.mxu1 %v3256_v57 }
  0x71   : > { %2588 = vmatprep.mubr.f32.mxu0 %v3129_v48 }
  0x74   : > { %2589 = vmatmul.mubr.f32.gmra.mrb[8].mxu0 %v3142_v53  ;;  %2633 = vmatmul.mubr.f32.vlgmr.msra.gmra.mrb[16].mxu1 %v1533_v16 }
  0x75   : > { %2591 = vmatprep.mubr.f32.mxu0 %v3162_v0  ;;  %2701 = vmatpush3.bf16.xpose.msra.mxu1 %v2698_v47 }
  0x76   : > { %2639 = vmatprep.mubr.f32.mxu1 %v3044_v20  ;;  %2703 = vmatprep.subr.bf16.mxu1 %v2702_v32 }
  0x78   : > { %2592 = vmatmul.mubr.f32.gmra.mrb[10].mxu0 %v3179_v9 }
  0x79   : > { %2594 = vmatprep.mubr.f32.mxu0 %v3220_v52 }
  0x7c   : > { %2595 = vmatmul.mubr.f32.gmra.mrb[12].mxu0 %v3237_v8  ;;  %2640 = vmatmul.mubr.f32.vlgmr.msra.gmra.mrb[16].mxu1 %v3287_v21 }
  0x7d   : > { %2597 = vmatprep.mubr.f32.mxu0 %v3241_v14  ;;  %2705 = vmatpush3.bf16.xpose.msra.mxu1 %v2702_v32 }
  0x7e   : > { %2646 = vmatprep.mubr.f32.mxu1 %v3062_v27  ;;  %2707 = vmatprep.subr.bf16.mxu1 %v3298_v26 }
  0x80   : > { %2598 = vmatmul.mubr.f32.gmra.mrb[14].mxu0 %v3250_v25 }
  0x81   : > { %2604 = vmatprep.mubr.f32.mxu0 %v3028_v10 }
  0x84   : > { %2605 = vmatmul.mubr.f32.vlgmr.msra.gmra.mrb[0].mxu0 %v3030_v11  ;;  %2647 = vmatmul.mubr.f32.vlgmr.msra.gmra.mrb[16].mxu1 %v1530_v41 }
  0x85   : > { %2607 = vmatprep.mubr.f32.mxu0 %v3032_v12  ;;  %2709 = vmatpush3.bf16.xpose.msra.mxu1 %v3298_v26 }
  0x86   : > { %2653 = vmatprep.mubr.f32.mxu1 %v3171_v5  ;;  %2711 = vmatprep.subr.bf16.mxu1 %v2710_v54 }
  0x88   : > { %2608 = vmatmul.mubr.f32.gmra.mrb[2].mxu0 %v3049_v22 }
  0x89   : > { %2610 = vmatprep.mubr.f32.mxu0 %v3068_v29 }
  0x8c   : > { %2611 = vmatmul.mubr.f32.gmra.mrb[4].mxu0 %v3070_v30  ;;  %2654 = vmatmul.mubr.f32.vlgmr.msra.gmra.mrb[16].mxu1 %v1531_v44 }
  0x8d   : > { %2613 = vmatprep.mubr.f32.mxu0 %v3092_v39  ;;  %2713 = vmatpush3.bf16.xpose.msra.mxu1 %v2710_v54 }
  0x8e   : > { %2660 = vmatprep.mubr.f32.mxu1 %v3044_v20  ;;  %2715 = vmatprep.subr.bf16.mxu1 %v3298_v26 }
  0x90   : > { %2614 = vmatmul.mubr.f32.gmra.mrb[6].mxu0 %v3094_v40 }
  0x91   : > { %2616 = vmatprep.mubr.f32.mxu0 %v3129_v48 }
  0x94   : > { %2617 = vmatmul.mubr.f32.gmra.mrb[8].mxu0 %v3142_v53  ;;  %2661 = vmatmul.mubr.f32.vlgmr.msra.gmra.mrb[16].mxu1 %v3287_v21 }
  0x95   : > { %2619 = vmatprep.mubr.f32.mxu0 %v3162_v0  ;;  %2717 = vmatpush3.bf16.xpose.msra.mxu1 %v3298_v26 }
  0x96   : > { %2667 = vmatprep.mubr.f32.mxu1 %v3044_v20 }
  0x98   : > { %2620 = vmatmul.mubr.f32.gmra.mrb[10].mxu0 %v3179_v9 }
  0x99   : > { %2622 = vmatprep.mubr.f32.mxu0 %v3220_v52 }
  0x9c   : > { %2623 = vmatmul.mubr.f32.gmra.mrb[12].mxu0 %v3237_v8  ;;  %2668 = vmatmul.mubr.f32.vlgmr.msra.gmra.mrb[16].mxu1 %v3287_v21 }
  0x9d   : > { %2625 = vmatprep.mubr.f32.mxu0 %v3241_v14 }
  0xa0   : > { %2626 = vmatmul.mubr.f32.gmra.mrb[14].mxu0 %v3250_v25 }
 0x11e   : > { %v2494_v10 = vpop.f32.mrb[0].mxu1 }
 0x11f   : > { %v652_v11 = vpop.f32.mrb[1].mxu1 }
 0x122   : > { %v2497_v12 = vpop.f32.mrb[2].mxu1 }
 0x123   : > { %v664_v22 = vpop.f32.mrb[3].mxu1 }
 0x126   : > { %v2500_v27 = vpop.f32.mrb[4].mxu1 }
 0x127   : > { %v676_v29 = vpop.f32.mrb[5].mxu1 }
 0x12a   : > { %v2503_v30 = vpop.f32.mrb[6].mxu1 }
 0x12b   : > { %v688_v20 = vpop.f32.mrb[7].mxu1 }
 0x12e   : > { %v2506_v39 = vpop.f32.mrb[8].mxu1 }
 0x12f   : > { %v700_v40 = vpop.f32.mrb[9].mxu1 }
 0x132   : > { %v2509_v48 = vpop.f32.mrb[10].mxu1 }
 0x133   : > { %v712_v53 = vpop.f32.mrb[11].mxu1 }
 0x13e   : > { %v2540_v55 = vpop.f32.mrb[12].mxu1 }
 0x13f   : > { %v902_v56 = vpop.f32.mrb[13].mxu1 }
 0x142   : > { %v2543_v58 = vpop.f32.mrb[14].mxu1 }
 0x143   : > { %v916_v63 = vpop.f32.mrb[15].mxu1 }
 0x157   : > { %v2606_v0 = vpop.f32.mrb[0].mxu0 }
 0x158   : > { %v2720_v2 = vadd.f32 %v2606_v0, %v2494_v10  ;;  %v1358_v4 = vpop.f32.mrb[1].mxu0 }
 0x159   : > { %v2721_v5 = vadd.f32 %v1358_v4, %v652_v11 }
 0x15a   : > { %1988 = vmin.xlane.f32.xlu1 %v2720_v2  ;;  %1956 = vmax.xlane.f32.xlu0 %v2720_v2 }
 0x15b   : > { %v2609_v7 = vpop.f32.mrb[2].mxu0 }
 0x15c   : > { %v2722_v9 = vadd.f32 %v2609_v7, %v2497_v12  ;;  %v1370_v15 = vpop.f32.mrb[3].mxu0 }
 0x15d   : > { %v2723_v17 = vadd.f32 %v1370_v15, %v664_v22 }
 0x15e   : > { %1954 = vmax.xlane.f32.xlu0 %v2721_v5  ;;  %1960 = vmax.xlane.f32.xlu1 %v2722_v9 }
 0x15f   : > { %v2612_v24 = vpop.f32.mrb[4].mxu0 }
 0x160   : > { %v2724_v25 = vadd.f32 %v2612_v24, %v2500_v27  ;;  %v1382_v36 = vpop.f32.mrb[5].mxu0 }
 0x161   : > { %v2725_v52 = vadd.f32 %v1382_v36, %v676_v29 }
 0x162   : > { %1986 = vmin.xlane.f32.xlu0 %v2721_v5  ;;  %1992 = vmin.xlane.f32.xlu1 %v2722_v9 }
 0x163   : > { %v2615_v61 = vpop.f32.mrb[6].mxu0 }
 0x164   : > { %v2726_v3 = vadd.f32 %v2615_v61, %v2503_v30  ;;  %v1394_v8 = vpop.f32.mrb[7].mxu0 }
 0x165   : > { %v2727_v14 = vadd.f32 %v1394_v8, %v688_v20 }
 0x166   : > { %1990 = vmin.xlane.f32.xlu0 %v2723_v17  ;;  %1958 = vmax.xlane.f32.xlu1 %v2723_v17 }
 0x167   : > { %v2618_v43 = vpop.f32.mrb[8].mxu0 }
 0x168   : > { %v2728_v45 = vadd.f32 %v2618_v43, %v2506_v39  ;;  %v1406_v57 = vpop.f32.mrb[9].mxu0 }
 0x169   : > { %v2729_v6 = vadd.f32 %v1406_v57, %v700_v40 }
 0x16a   : > { %1964 = vmax.xlane.f32.xlu1 %v2724_v25  ;;  %1962 = vmax.xlane.f32.xlu0 %v2725_v52 }
 0x16b   : > { %v2621_v49 = vpop.f32.mrb[10].mxu0 }
 0x16c   : > { %v2730_v50 = vadd.f32 %v2621_v49, %v2509_v48  ;;  %v1418_v51 = vpop.f32.mrb[11].mxu0 }
 0x16d   : > { %v2731_v59 = vadd.f32 %v1418_v51, %v712_v53 }
 0x16e   : > { %1996 = vmin.xlane.f32.xlu1 %v2724_v25  ;;  %1994 = vmin.xlane.f32.xlu0 %v2725_v52 }
 0x16f   : > { %v2624_v62 = vpop.f32.mrb[12].mxu0  ;;  %v3385_v31 = vpop.f32.mrb[16].mxu1 }
 0x170   : > { %v2732_v13 = vadd.f32 %v2624_v62, %v2540_v55  ;;  %v1430_v18 = vpop.f32.mrb[13].mxu0  ;;  %v3387_v35 = vpop.f32.mrb[17].mxu1  ;;  %2024 = vst.msk [vmem:[%s3103_s5 + $0x8] sm:$0x1] (!%p2321_p11), %vm2023_vm2, %v3385_v31 }
 0x171   : > { %v2733_v60 = vadd.f32 %v1430_v18, %v902_v56  ;;  %2022 = vst.msk [vmem:[%s3103_s5] sm:$0xff] (!%p2321_p11), %vm295_vm1, %v3387_v35 }
 0x172   : > { %1968 = vmax.xlane.f32.xlu1 %v2726_v3  ;;  %1966 = vmax.xlane.f32.xlu0 %v2727_v14 }
 0x173   : > { %v2627_v19 = vpop.f32.mrb[14].mxu0 }
 0x174   : > { %v2734_v34 = vadd.f32 %v2627_v19, %v2543_v58  ;;  %v1442_v1 = vpop.f32.mrb[15].mxu0 }
 0x175   : > { %v2735_v23 = vadd.f32 %v1442_v1, %v916_v63 }
 0x176   : > { %2000 = vmin.xlane.f32.xlu1 %v2726_v3  ;;  %1998 = vmin.xlane.f32.xlu0 %v2727_v14 }
 0x17a   : > { %1972 = vmax.xlane.f32.xlu1 %v2728_v45  ;;  %1970 = vmax.xlane.f32.xlu0 %v2729_v6 }
 0x17e   : > { %2004 = vmin.xlane.f32.xlu1 %v2728_v45  ;;  %2002 = vmin.xlane.f32.xlu0 %v2729_v6 }
 0x182   : > { %1976 = vmax.xlane.f32.xlu1 %v2730_v50  ;;  %1974 = vmax.xlane.f32.xlu0 %v2731_v59 }
 0x186   : > { %2008 = vmin.xlane.f32.xlu1 %v2730_v50  ;;  %2006 = vmin.xlane.f32.xlu0 %v2731_v59 }
 0x18a   : > { %1980 = vmax.xlane.f32.xlu1 %v2732_v13  ;;  %1978 = vmax.xlane.f32.xlu0 %v2733_v60 }
 0x18e   : > { %2012 = vmin.xlane.f32.xlu1 %v2732_v13  ;;  %2010 = vmin.xlane.f32.xlu0 %v2733_v60 }
 0x192   : > { %1984 = vmax.xlane.f32.xlu1 %v2734_v34  ;;  %1982 = vmax.xlane.f32.xlu0 %v2735_v23 }
 0x196   : > { %2016 = vmin.xlane.f32.xlu1 %v2734_v34  ;;  %2014 = vmin.xlane.f32.xlu0 %v2735_v23 }
 0x1e7   : > { %v3389_v33 = vpop.xlane.xlu1 %1988  ;;  %v3391_v21 = vpop.xlane.xlu0 %1956 }
 0x1e8   : > { %2027 = vst.msk [vmem:[%s3108_s8 + $0x8] sm:$0xff] (!%p2321_p11), %vm2025_vm3, %v3391_v21  ;;  %2043 = vst.msk [vmem:[%s3126_s12 + $0x8] sm:$0xff] (!%p2321_p11), %vm2025_vm3, %v3389_v33 }
 0x1eb   : > { %v3393_v26 = vpop.xlane.xlu0 %1954  ;;  %v3395_v28 = vpop.xlane.xlu1 %1960 }
 0x1ec   : > { %2026 = vst.msk [vmem:[%s3108_s8] sm:$0xff] (!%p2321_p11), %vm2025_vm3, %v3393_v26  ;;  %2029 = vst.msk [vmem:[%s3108_s8 + $0x18] sm:$0xff] (!%p2321_p11), %vm2025_vm3, %v3395_v28 }
 0x1ef   : > { %v3397_v37 = vpop.xlane.xlu0 %1986  ;;  %v3399_v38 = vpop.xlane.xlu1 %1992 }
 0x1f0   : > { %2042 = vst.msk [vmem:[%s3126_s12] sm:$0xff] (!%p2321_p11), %vm2025_vm3, %v3397_v37  ;;  %2045 = vst.msk [vmem:[%s3126_s12 + $0x18] sm:$0xff] (!%p2321_p11), %vm2025_vm3, %v3399_v38 }
 0x1f3   : > { %v3401_v42 = vpop.xlane.xlu0 %1990  ;;  %v3403_v41 = vpop.xlane.xlu1 %1958 }
 0x1f4   : > { %2028 = vst.msk [vmem:[%s3108_s8 + $0x10] sm:$0xff] (!%p2321_p11), %vm2025_vm3, %v3403_v41  ;;  %2044 = vst.msk [vmem:[%s3126_s12 + $0x10] sm:$0xff] (!%p2321_p11), %vm2025_vm3, %v3401_v42 }
 0x1f7   : > { %v3405_v44 = vpop.xlane.xlu1 %1964  ;;  %v3407_v46 = vpop.xlane.xlu0 %1962 }
 0x1f8   : > { %2030 = vst.msk [vmem:[%s3108_s8 + $0x20] sm:$0xff] (!%p2321_p11), %vm2025_vm3, %v3407_v46  ;;  %2031 = vst.msk [vmem:[%s3108_s8 + $0x28] sm:$0xff] (!%p2321_p11), %vm2025_vm3, %v3405_v44 }
 0x1fb   : > { %v3409_v16 = vpop.xlane.xlu1 %1996  ;;  %v3411_v47 = vpop.xlane.xlu0 %1994 }
 0x1fc   : > { %2046 = vst.msk [vmem:[%s3126_s12 + $0x20] sm:$0xff] (!%p2321_p11), %vm2025_vm3, %v3411_v47  ;;  %2047 = vst.msk [vmem:[%s3126_s12 + $0x28] sm:$0xff] (!%p2321_p11), %vm2025_vm3, %v3409_v16 }
 0x1ff   : > { %v3413_v32 = vpop.xlane.xlu1 %1968  ;;  %v3415_v54 = vpop.xlane.xlu0 %1966 }
 0x200   : > { %2032 = vst.msk [vmem:[%s3108_s8 + $0x30] sm:$0xff] (!%p2321_p11), %vm2025_vm3, %v3415_v54  ;;  %2033 = vst.msk [vmem:[%s3108_s8 + $0x38] sm:$0xff] (!%p2321_p11), %vm2025_vm3, %v3413_v32 }
 0x203   : > { %v3417_v10 = vpop.xlane.xlu1 %2000  ;;  %v3419_v11 = vpop.xlane.xlu0 %1998 }
 0x204   : > { %2048 = vst.msk [vmem:[%s3126_s12 + $0x30] sm:$0xff] (!%p2321_p11), %vm2025_vm3, %v3419_v11  ;;  %2049 = vst.msk [vmem:[%s3126_s12 + $0x38] sm:$0xff] (!%p2321_p11), %vm2025_vm3, %v3417_v10 }
 0x207   : > { %v3421_v12 = vpop.xlane.xlu1 %1972  ;;  %v3423_v22 = vpop.xlane.xlu0 %1970 }
 0x208   : > { %2034 = vst.msk [vmem:[%s3108_s8 + $0x40] sm:$0xff] (!%p2321_p11), %vm2025_vm3, %v3423_v22  ;;  %2035 = vst.msk [vmem:[%s3108_s8 + $0x48] sm:$0xff] (!%p2321_p11), %vm2025_vm3, %v3421_v12 }
 0x20b   : > { %v3425_v27 = vpop.xlane.xlu1 %2004  ;;  %v3427_v29 = vpop.xlane.xlu0 %2002 }
 0x20c   : > { %2050 = vst.msk [vmem:[%s3126_s12 + $0x40] sm:$0xff] (!%p2321_p11), %vm2025_vm3, %v3427_v29  ;;  %2051 = vst.msk [vmem:[%s3126_s12 + $0x48] sm:$0xff] (!%p2321_p11), %vm2025_vm3, %v3425_v27 }
 0x20f   : > { %v3429_v30 = vpop.xlane.xlu1 %1976  ;;  %v3431_v20 = vpop.xlane.xlu0 %1974 }
 0x210   : > { %2036 = vst.msk [vmem:[%s3108_s8 + $0x50] sm:$0xff] (!%p2321_p11), %vm2025_vm3, %v3431_v20  ;;  %2037 = vst.msk [vmem:[%s3108_s8 + $0x58] sm:$0xff] (!%p2321_p11), %vm2025_vm3, %v3429_v30 }
 0x213   : > { %v3433_v39 = vpop.xlane.xlu1 %2008  ;;  %v3435_v40 = vpop.xlane.xlu0 %2006 }
 0x214   : > { %2052 = vst.msk [vmem:[%s3126_s12 + $0x50] sm:$0xff] (!%p2321_p11), %vm2025_vm3, %v3435_v40  ;;  %2053 = vst.msk [vmem:[%s3126_s12 + $0x58] sm:$0xff] (!%p2321_p11), %vm2025_vm3, %v3433_v39 }
 0x217   : > { %v3437_v48 = vpop.xlane.xlu1 %1980  ;;  %v3439_v53 = vpop.xlane.xlu0 %1978 }
 0x218   : > { %2038 = vst.msk [vmem:[%s3108_s8 + $0x60] sm:$0xff] (!%p2321_p11), %vm2025_vm3, %v3439_v53  ;;  %2039 = vst.msk [vmem:[%s3108_s8 + $0x68] sm:$0xff] (!%p2321_p11), %vm2025_vm3, %v3437_v48 }
 0x21b   : > { %v3441_v55 = vpop.xlane.xlu1 %2012  ;;  %v3443_v56 = vpop.xlane.xlu0 %2010 }
 0x21c   : > { %2054 = vst.msk [vmem:[%s3126_s12 + $0x60] sm:$0xff] (!%p2321_p11), %vm2025_vm3, %v3443_v56  ;;  %2055 = vst.msk [vmem:[%s3126_s12 + $0x68] sm:$0xff] (!%p2321_p11), %vm2025_vm3, %v3441_v55 }
 0x21d   : > { %2021 = sbr.rel (%p2321_p11) target bundleno = 549 (0x225), region = 70 }
 0x21f   : > { %v3445_v58 = vpop.xlane.xlu1 %1984  ;;  %v3447_v63 = vpop.xlane.xlu0 %1982 }
 0x220   : > { %2040 = vst.msk [vmem:[%s3108_s8 + $0x70] sm:$0xff] (!%p2321_p11), %vm2025_vm3, %v3447_v63  ;;  %2041 = vst.msk [vmem:[%s3108_s8 + $0x78] sm:$0xff] (!%p2321_p11), %vm2025_vm3, %v3445_v58 }
 0x223   : > { %v3449_v0 = vpop.xlane.xlu1 %2016  ;;  %v3451_v2 = vpop.xlane.xlu0 %2014 }
 0x224   : > { %2056 = vst.msk [vmem:[%s3126_s12 + $0x70] sm:$0xff] %vm2025_vm3, %v3451_v2  ;;  %2057 = vst.msk [vmem:[%s3126_s12 + $0x78] sm:$0xff] %vm2025_vm3, %v3449_v0 }
 0x225 PF: > { %p2322_p12 = scmp.le.s32.totalorder %s2904_s17, 0 }
 0x226   : > { %v2062_v4 = vld [vmem:[%s3103_s5] sm:$0xff] (!%p2322_p12)  ;;  %v2063_v5 = vld [vmem:[%s3103_s5 + $0x8] sm:$0x1] (!%p2322_p12)  ;;  %vm2067_vm4 = vcmask (!%p2322_p12), 65536   ;;  %vm2101_vm5 = vcmask (!%p2322_p12), 7168   ;;  %v2071_v25 = vld [vmem:[%s3108_s8 + $0x10] sm:$0xff] (!%p2322_p12) }
 0x227   : > { %2061 = sbr.rel (%p2322_p12) target bundleno = 571 (0x23b), region = 74  ;;  %v2069_v7 = vld [vmem:[%s3108_s8] sm:$0xff] (!%p2322_p12)  ;;  %v2064_v9 = vadd.f32 (!%p2322_p12), %v2062_v4, %v3387_v35  ;;  %v2065_v15 = vadd.f32 (!%p2322_p12), %v3385_v31, %v2063_v5  ;;  %v2070_v24 = vld [vmem:[%s3108_s8 + $0x8] sm:$0xff] (!%p2322_p12)  ;;  %v2072_v36 = vld [vmem:[%s3108_s8 + $0x18] sm:$0xff] (!%p2322_p12)  ;;  %v2087_v61 = vmax.f32 (!%p2322_p12), %v2071_v25, %v3403_v41 }
 0x228   : > { %v2085_v17 = vmax.f32 (!%p2322_p12), %v2069_v7, %v3393_v26  ;;  %v2086_v52 = vmax.f32 (!%p2322_p12), %v2070_v24, %v3391_v21  ;;  %v2088_v3 = vmax.f32 (!%p2322_p12), %v2072_v36, %v3395_v28  ;;  %v2073_v8 = vld [vmem:[%s3108_s8 + $0x20] sm:$0xff] (!%p2322_p12)  ;;  %v2074_v14 = vld [vmem:[%s3108_s8 + $0x28] sm:$0xff] (!%p2322_p12)  ;;  %v2075_v43 = vld [vmem:[%s3108_s8 + $0x30] sm:$0xff] (!%p2322_p12) }
 0x229   : > { %2066 = vst.msk [vmem:[%s3103_s5] sm:$0xff] (!%p2322_p12), %vm295_vm1, %v2064_v9  ;;  %v2089_v45 = vmax.f32 (!%p2322_p12), %v2073_v8, %v3407_v46  ;;  %v2090_v57 = vmax.f32 (!%p2322_p12), %v2074_v14, %v3405_v44  ;;  %v2091_v6 = vmax.f32 (!%p2322_p12), %v2075_v43, %v3415_v54  ;;  %v2076_v49 = vld [vmem:[%s3108_s8 + $0x38] sm:$0xff] (!%p2322_p12)  ;;  %v2077_v50 = vld [vmem:[%s3108_s8 + $0x40] sm:$0xff] (!%p2322_p12)  ;;  %v2078_v51 = vld [vmem:[%s3108_s8 + $0x48] sm:$0xff] (!%p2322_p12) }
 0x22a   : > { %2068 = vst.msk [vmem:[%s3103_s5 + $0x8] sm:$0x1] (!%p2322_p12), %vm2067_vm4, %v2065_v15  ;;  %v2092_v59 = vmax.f32 (!%p2322_p12), %v2076_v49, %v3413_v32  ;;  %v2093_v62 = vmax.f32 (!%p2322_p12), %v2077_v50, %v3423_v22  ;;  %v2094_v13 = vmax.f32 (!%p2322_p12), %v2078_v51, %v3421_v12  ;;  %v2079_v18 = vld [vmem:[%s3108_s8 + $0x50] sm:$0xff] (!%p2322_p12)  ;;  %v2080_v60 = vld [vmem:[%s3108_s8 + $0x58] sm:$0xff] (!%p2322_p12)  ;;  %v2081_v19 = vld [vmem:[%s3108_s8 + $0x60] sm:$0xff] (!%p2322_p12) }
 0x22b   : > { %2102 = vst.msk [vmem:[%s3108_s8] sm:$0xff] (!%p2322_p12), %vm2101_vm5, %v2085_v17  ;;  %2103 = vst.msk [vmem:[%s3108_s8 + $0x8] sm:$0xff] (!%p2322_p12), %vm2101_vm5, %v2086_v52  ;;  %v2095_v34 = vmax.f32 (!%p2322_p12), %v2079_v18, %v3431_v20  ;;  %v2096_v1 = vmax.f32 (!%p2322_p12), %v2080_v60, %v3429_v30  ;;  %v2097_v23 = vmax.f32 (!%p2322_p12), %v2081_v19, %v3439_v53  ;;  %v2082_v31 = vld [vmem:[%s3108_s8 + $0x68] sm:$0xff] (!%p2322_p12)  ;;  %v2083_v35 = vld [vmem:[%s3108_s8 + $0x70] sm:$0xff] (!%p2322_p12) }
 0x22c   : > { %2104 = vst.msk [vmem:[%s3108_s8 + $0x10] sm:$0xff] (!%p2322_p12), %vm2101_vm5, %v2087_v61  ;;  %2105 = vst.msk [vmem:[%s3108_s8 + $0x18] sm:$0xff] (!%p2322_p12), %vm2101_vm5, %v2088_v3  ;;  %v2084_v21 = vld [vmem:[%s3108_s8 + $0x78] sm:$0xff] (!%p2322_p12)  ;;  %v2098_v26 = vmax.f32 (!%p2322_p12), %v2082_v31, %v3437_v48  ;;  %v2099_v28 = vmax.f32 (!%p2322_p12), %v2083_v35, %v3447_v63  ;;  %v2118_v44 = vld [vmem:[%s3126_s12] sm:$0xff] (!%p2322_p12) }
 0x22d   : > { %2106 = vst.msk [vmem:[%s3108_s8 + $0x20] sm:$0xff] (!%p2322_p12), %vm2101_vm5, %v2089_v45  ;;  %2107 = vst.msk [vmem:[%s3108_s8 + $0x28] sm:$0xff] (!%p2322_p12), %vm2101_vm5, %v2090_v57  ;;  %v2100_v41 = vmax.f32 (!%p2322_p12), %v2084_v21, %v3445_v58  ;;  %v2119_v46 = vld [vmem:[%s3126_s12 + $0x8] sm:$0xff] (!%p2322_p12)  ;;  %v2120_v32 = vld [vmem:[%s3126_s12 + $0x10] sm:$0xff] (!%p2322_p12)  ;;  %v2134_v54 = vmin.f32 (!%p2322_p12), %v2118_v44, %v3397_v37 }
 0x22e   : > { %2108 = vst.msk [vmem:[%s3108_s8 + $0x30] sm:$0xff] %vm2101_vm5, %v2091_v6  ;;  %2109 = vst.msk [vmem:[%s3108_s8 + $0x38] sm:$0xff] %vm2101_vm5, %v2092_v59  ;;  %v2135_v12 = vmin.f32 %v2119_v46, %v3389_v33  ;;  %v2136_v22 = vmin.f32 %v2120_v32, %v3401_v42  ;;  %v2121_v30 = vld [vmem:[%s3126_s12 + $0x18] sm:$0xff]  ;;  %v2122_v20 = vld [vmem:[%s3126_s12 + $0x20] sm:$0xff] }
 0x22f   : > { %2110 = vst.msk [vmem:[%s3108_s8 + $0x40] sm:$0xff] %vm2101_vm5, %v2093_v62  ;;  %2111 = vst.msk [vmem:[%s3108_s8 + $0x48] sm:$0xff] %vm2101_vm5, %v2094_v13  ;;  %v2123_v48 = vld [vmem:[%s3126_s12 + $0x28] sm:$0xff]  ;;  %v2137_v37 = vmin.f32 %v2121_v30, %v3399_v38  ;;  %v2138_v33 = vmin.f32 %v2122_v20, %v3411_v47  ;;  %v2124_v53 = vld [vmem:[%s3126_s12 + $0x30] sm:$0xff] }
 0x230   : > { %2112 = vst.msk [vmem:[%s3108_s8 + $0x50] sm:$0xff] %vm2101_vm5, %v2095_v34  ;;  %2113 = vst.msk [vmem:[%s3108_s8 + $0x58] sm:$0xff] %vm2101_vm5, %v2096_v1  ;;  %v2139_v42 = vmin.f32 %v2123_v48, %v3409_v16  ;;  %v2125_v58 = vld [vmem:[%s3126_s12 + $0x38] sm:$0xff]  ;;  %v2126_v63 = vld [vmem:[%s3126_s12 + $0x40] sm:$0xff]  ;;  %v2140_v38 = vmin.f32 %v2124_v53, %v3419_v11 }
 0x231   : > { %2114 = vst.msk [vmem:[%s3108_s8 + $0x60] sm:$0xff] %vm2101_vm5, %v2097_v23  ;;  %2115 = vst.msk [vmem:[%s3108_s8 + $0x68] sm:$0xff] %vm2101_vm5, %v2098_v26  ;;  %v2141_v47 = vmin.f32 %v2125_v58, %v3417_v10  ;;  %v2142_v16 = vmin.f32 %v2126_v63, %v3427_v29  ;;  %v2127_v4 = vld [vmem:[%s3126_s12 + $0x48] sm:$0xff]  ;;  %v2128_v5 = vld [vmem:[%s3126_s12 + $0x50] sm:$0xff] }
 0x232   : > { %2116 = vst.msk [vmem:[%s3108_s8 + $0x70] sm:$0xff] %vm2101_vm5, %v2099_v28  ;;  %2117 = vst.msk [vmem:[%s3108_s8 + $0x78] sm:$0xff] %vm2101_vm5, %v2100_v41  ;;  %v2129_v7 = vld [vmem:[%s3126_s12 + $0x58] sm:$0xff]  ;;  %v2143_v11 = vmin.f32 %v2127_v4, %v3425_v27  ;;  %v2144_v10 = vmin.f32 %v2128_v5, %v3435_v40  ;;  %v2130_v9 = vld [vmem:[%s3126_s12 + $0x60] sm:$0xff] }
 0x233   : > { %2150 = vst.msk [vmem:[%s3126_s12] sm:$0xff] %vm2101_vm5, %v2134_v54  ;;  %2151 = vst.msk [vmem:[%s3126_s12 + $0x8] sm:$0xff] %vm2101_vm5, %v2135_v12  ;;  %v2145_v29 = vmin.f32 %v2129_v7, %v3433_v39  ;;  %v2131_v15 = vld [vmem:[%s3126_s12 + $0x68] sm:$0xff]  ;;  %v2132_v17 = vld [vmem:[%s3126_s12 + $0x70] sm:$0xff]  ;;  %v2146_v24 = vmin.f32 %v2130_v9, %v3443_v56 }
 0x234   : > { %2152 = vst.msk [vmem:[%s3126_s12 + $0x10] sm:$0xff] %vm2101_vm5, %v2136_v22  ;;  %2153 = vst.msk [vmem:[%s3126_s12 + $0x18] sm:$0xff] %vm2101_vm5, %v2137_v37  ;;  %v2147_v27 = vmin.f32 %v2131_v15, %v3441_v55  ;;  %v2148_v40 = vmin.f32 %v2132_v17, %v3451_v2  ;;  %v2133_v25 = vld [vmem:[%s3126_s12 + $0x78] sm:$0xff] }
 0x235   : > { %2154 = vst.msk [vmem:[%s3126_s12 + $0x20] sm:$0xff] %vm2101_vm5, %v2138_v33  ;;  %2155 = vst.msk [vmem:[%s3126_s12 + $0x28] sm:$0xff] %vm2101_vm5, %v2139_v42  ;;  %v2149_v39 = vmin.f32 %v2133_v25, %v3449_v0 }
 0x236   : > { %2156 = vst.msk [vmem:[%s3126_s12 + $0x30] sm:$0xff] %vm2101_vm5, %v2140_v38  ;;  %2157 = vst.msk [vmem:[%s3126_s12 + $0x38] sm:$0xff] %vm2101_vm5, %v2141_v47 }
 0x237   : > { %2158 = vst.msk [vmem:[%s3126_s12 + $0x40] sm:$0xff] %vm2101_vm5, %v2142_v16  ;;  %2159 = vst.msk [vmem:[%s3126_s12 + $0x48] sm:$0xff] %vm2101_vm5, %v2143_v11 }
 0x238   : > { %2160 = vst.msk [vmem:[%s3126_s12 + $0x50] sm:$0xff] %vm2101_vm5, %v2144_v10  ;;  %2161 = vst.msk [vmem:[%s3126_s12 + $0x58] sm:$0xff] %vm2101_vm5, %v2145_v29 }
 0x239   : > { %2162 = vst.msk [vmem:[%s3126_s12 + $0x60] sm:$0xff] %vm2101_vm5, %v2146_v24  ;;  %2163 = vst.msk [vmem:[%s3126_s12 + $0x68] sm:$0xff] %vm2101_vm5, %v2147_v27 }
 0x23a   : > { %2164 = vst.msk [vmem:[%s3126_s12 + $0x70] sm:$0xff] %vm2101_vm5, %v2148_v40  ;;  %2165 = vst.msk [vmem:[%s3126_s12 + $0x78] sm:$0xff] %vm2101_vm5, %v2149_v39 }
 0x23b PF: > { %s15_s21 = sadd.s32 1, %s2920_s21   ;;  %s3726_s15 = smov %s2900_s16 }
 0x23c   : > { %p12_p13 = scmp.ge.s32.totalorder %s15_s21, 6   ;;  %s3727_s16 = smov %s2998_s28 }
 0x23d   : > { %s3728_s17 = smov %s2912_s19  ;;  %s3729_s18 = smov %s2916_s20 }
 0x23e   : > { %s3730_s19 = smov %s3733_s22  ;;  %s3731_s20 = smov %s3737_s23 }
 0x23f   :  { %14 = sbr.rel (!%p12_p13) target bundleno = 4 (0x4), region = 133 }

</bundles_post_ra>
